<compile_context>
chip_gen: v6e
topology: v6e:2x2x1
jax: 0.10.0
libtpu: 0.0.40
codegen_flags: <defaults>
</compile_context>

<pallas_src>
import jax
import jax.numpy as jnp
from jax.experimental import pallas as pl
from jax.experimental.pallas import tpu as pltpu

# Logical (PyTorch) dims.
D_IN, D_H, D_Z = 560, 200, 20
# Lane-padded dims (last-dim multiples of 128).
D_IN_P, D_H_P, D_Z_P = 640, 256, 128
B_TILE_MAX = 256


def _round_up(n, m):
    return ((n + m - 1) // m) * m


def _vae_kernel(x_ref, w1_ref, b1_ref, wh_ref, bh_ref,
                w3_ref, b3_ref, w4_ref, b4_ref, eps_ref,
                recon_ref, mulv_ref):
    # ----- encode: h1 = relu(x @ W1 + b1) -----
    x = x_ref[...]                                               # (bt, 640) f32
    h1 = jnp.dot(x.astype(jnp.bfloat16), w1_ref[...],
                 preferred_element_type=jnp.float32) + b1_ref[...]
    h1 = jnp.maximum(h1, 0.0)                                    # (bt, 256) f32

    # ----- fused mu/logvar head: cols [0:128)=mu, [128:256)=logvar (padded) -----
    head = jnp.dot(h1.astype(jnp.bfloat16), wh_ref[...],
                   preferred_element_type=jnp.float32) + bh_ref[...]
    mulv_ref[...] = head                                         # lane-dense store

    mu = head[:, :D_Z_P]                                         # (bt, 128)
    logvar = head[:, D_Z_P:]                                     # (bt, 128)

    # ----- reparametrize: z = eps * exp(0.5*logvar) + mu -----
    std = jnp.exp(0.5 * logvar)
    z = eps_ref[...] * std + mu                                  # (bt, 128) f32

    # ----- decode: h3 = relu(z @ W3 + b3); recon = sigmoid(h3 @ W4 + b4) -----
    h3 = jnp.dot(z.astype(jnp.bfloat16), w3_ref[...],
                 preferred_element_type=jnp.float32) + b3_ref[...]
    h3 = jnp.maximum(h3, 0.0)                                    # (bt, 256)
    logits = jnp.dot(h3.astype(jnp.bfloat16), w4_ref[...],
                     preferred_element_type=jnp.float32) + b4_ref[...]
    # sigmoid via EUP exp + approximate reciprocal; clamp keeps exact [0,1].
    recon = pl.reciprocal(1.0 + jnp.exp(-logits), approx=True)
    recon_ref[...] = jnp.clip(recon, 0.0, 1.0)                   # (bt, 640)


def pack_params(params):
    """Fuse mu/logvar heads, zero-pad to lane multiples, cast weights to bf16.

    `params` are in transposed-PyTorch layout: W is (in_features, out_features),
    b is (1, out_features)."""
    w1, b1, w21, b21, w22, b22, w3, b3, w4, b4 = params

    def pad_w(w, rows, cols):
        return jnp.pad(w, ((0, rows - w.shape[0]), (0, cols - w.shape[1])))

    def pad_b(b, cols):
        return jnp.pad(b, ((0, 0), (0, cols - b.shape[1])))

    w1p = pad_w(w1, D_IN_P, D_H_P).astype(jnp.bfloat16)
    b1p = pad_b(b1, D_H_P)

    # Fused head: columns [0:D_Z) = mu weights, [D_Z_P : D_Z_P+D_Z) = logvar.
    whp = jnp.zeros((D_H_P, 2 * D_Z_P), jnp.float32)
    whp = whp.at[:D_H, :D_Z].set(w21)
    whp = whp.at[:D_H, D_Z_P:D_Z_P + D_Z].set(w22)
    whp = whp.astype(jnp.bfloat16)
    bhp = jnp.zeros((1, 2 * D_Z_P), jnp.float32)
    bhp = bhp.at[:, :D_Z].set(b21)
    bhp = bhp.at[:, D_Z_P:D_Z_P + D_Z].set(b22)

    w3p = pad_w(w3, D_Z_P, D_H_P).astype(jnp.bfloat16)
    b3p = pad_b(b3, D_H_P)
    w4p = pad_w(w4, D_H_P, D_IN_P).astype(jnp.bfloat16)
    b4p = pad_b(b4, D_IN_P)
    return (w1p, b1p, whp, bhp, w3p, b3p, w4p, b4p)


@jax.jit
def vae_forward(x, packed_params, eps):
    """x: (B, 1, 28, 20) or (B, 560) f32; eps: (B, 20) ~ N(0,1).
    Returns (recon (B,560), mu (B,20), logvar (B,20))."""
    B = x.shape[0]
    x2d = x.reshape(B, D_IN).astype(jnp.float32)                 # x.view(-1, 560)

    # Batch tiling: multiple of 8 sublanes, capped at B_TILE_MAX.
    b_tile = min(B_TILE_MAX, _round_up(B, 8))
    b_pad = _round_up(B, b_tile)
    grid = (b_pad // b_tile,)

    x_p = jnp.pad(x2d, ((0, b_pad - B), (0, D_IN_P - D_IN)))
    eps_p = jnp.pad(eps.astype(jnp.float32),
                    ((0, b_pad - B), (0, D_Z_P - D_Z)))

    w1p, b1p, whp, bhp, w3p, b3p, w4p, b4p = packed_params

    def const_spec(a):
        # Whole array, same block every grid step -> stays resident in VMEM.
        return pl.BlockSpec(a.shape, lambda i: (0, 0))

    recon_p, mulv = pl.pallas_call(
        _vae_kernel,
        grid=grid,
        out_shape=(
            jax.ShapeDtypeStruct((b_pad, D_IN_P), jnp.float32),
            jax.ShapeDtypeStruct((b_pad, 2 * D_Z_P), jnp.float32),
        ),
        in_specs=[
            pl.BlockSpec((b_tile, D_IN_P), lambda i: (i, 0)),    # x
            const_spec(w1p), const_spec(b1p),
            const_spec(whp), const_spec(bhp),
            const_spec(w3p), const_spec(b3p),
            const_spec(w4p), const_spec(b4p),
            pl.BlockSpec((b_tile, D_Z_P), lambda i: (i, 0)),     # eps
        ],
        out_specs=(
            pl.BlockSpec((b_tile, D_IN_P), lambda i: (i, 0)),    # recon (padded)
            pl.BlockSpec((b_tile, 2 * D_Z_P), lambda i: (i, 0)), # packed mu|logvar
        ),
        compiler_params=pltpu.CompilerParams(
            dimension_semantics=("parallel",)),
    )(x_p, w1p, b1p, whp, bhp, w3p, b3p, w4p, b4p, eps_p)

    recon = recon_p[:B, :D_IN]
    mu = mulv[:B, :D_Z]
    logvar = mulv[:B, D_Z_P:D_Z_P + D_Z]
    return recon, mu, logvar


def init_params(key):
    """Deterministic init mimicking nn.Linear's U(-1/sqrt(fan_in), 1/sqrt(fan_in)).
    Weights stored as (in_features, out_features) — transposed PyTorch layout."""
    dims = [(D_IN, D_H), (D_H, D_Z), (D_H, D_Z), (D_Z, D_H), (D_H, D_IN)]
    params = []
    for (fan_in, fan_out) in dims:
        key, kw, kb = jax.random.split(key, 3)
        bound = 1.0 / jnp.sqrt(jnp.float32(fan_in))
        w = jax.random.uniform(kw, (fan_in, fan_out), jnp.float32, -bound, bound)
        b = jax.random.uniform(kb, (1, fan_out), jnp.float32, -bound, bound)
        params += [w, b]
    return tuple(params)


if __name__ == "__main__":
    key = jax.random.PRNGKey(0)
    k_params, k_x, k_eps = jax.random.split(key, 3)

    params = init_params(k_params)
    packed = pack_params(params)   # one-time: fuse heads, pad, bf16-cast

    # Frey-face sized input: NCHW (B, 1, 28, 20) -> flattened to (B, 560).
    B = 8
    x = jax.random.uniform(k_x, (B, 1, 28, 20), jnp.float32)
    # eps ~ N(0,1) for the reparametrization trick (generated in glue, fed in).
    # TODO(synk): could generate eps in-kernel via pltpu.prng_* instead.
    eps = jax.random.normal(k_eps, (B, D_Z), jnp.float32)

    recon, mu, logvar = vae_forward(x, packed, eps)
    jax.block_until_ready((recon, mu, logvar))

    assert recon.shape == (B, 560) and mu.shape == (B, 20) and logvar.shape == (B, 20)
    assert bool(jnp.all(jnp.isfinite(recon)))
    assert bool(jnp.all(recon >= 0.0) and jnp.all(recon <= 1.0))
    assert bool(jnp.all(jnp.isfinite(mu))) and bool(jnp.all(jnp.isfinite(logvar)))
    print("KERNEL_OK")
</pallas_src>

<mosaic_0001>
module attributes {stable_mosaic.version = 11 : i64} {
  func.func @_vae_kernel(%arg0: i32, %arg1: memref<8x640xf32, #tpu.memory_space<vmem>>, %arg2: memref<640x256xbf16, #tpu.memory_space<vmem>>, %arg3: memref<1x256xf32, #tpu.memory_space<vmem>>, %arg4: memref<256x256xbf16, #tpu.memory_space<vmem>>, %arg5: memref<1x256xf32, #tpu.memory_space<vmem>>, %arg6: memref<128x256xbf16, #tpu.memory_space<vmem>>, %arg7: memref<1x256xf32, #tpu.memory_space<vmem>>, %arg8: memref<256x640xbf16, #tpu.memory_space<vmem>>, %arg9: memref<1x640xf32, #tpu.memory_space<vmem>>, %arg10: memref<8x128xf32, #tpu.memory_space<vmem>>, %arg11: memref<8x640xf32, #tpu.memory_space<vmem>>, %arg12: memref<8x256xf32, #tpu.memory_space<vmem>>) attributes {dimension_semantics = [#tpu.dimension_semantics<parallel>], iteration_bounds = array<i64: 1>, scalar_prefetch = 0 : i64, scratch_operands = 0 : i64, tpu.core_type = #tpu.core_type<tc>, window_params = [{transform_indices = @transform_0, window_bounds = array<i64: 8, 640>}, {pipeline_mode = #tpu.pipeline_mode<synchronous>, transform_indices = @transform_1, window_bounds = array<i64: 640, 256>}, {pipeline_mode = #tpu.pipeline_mode<synchronous>, transform_indices = @transform_2, window_bounds = array<i64: 1, 256>}, {pipeline_mode = #tpu.pipeline_mode<synchronous>, transform_indices = @transform_3, window_bounds = array<i64: 256, 256>}, {pipeline_mode = #tpu.pipeline_mode<synchronous>, transform_indices = @transform_4, window_bounds = array<i64: 1, 256>}, {pipeline_mode = #tpu.pipeline_mode<synchronous>, transform_indices = @transform_5, window_bounds = array<i64: 128, 256>}, {pipeline_mode = #tpu.pipeline_mode<synchronous>, transform_indices = @transform_6, window_bounds = array<i64: 1, 256>}, {pipeline_mode = #tpu.pipeline_mode<synchronous>, transform_indices = @transform_7, window_bounds = array<i64: 256, 640>}, {pipeline_mode = #tpu.pipeline_mode<synchronous>, transform_indices = @transform_8, window_bounds = array<i64: 1, 640>}, {transform_indices = @transform_9, window_bounds = array<i64: 8, 128>}, {transform_indices = @transform_10, window_bounds = array<i64: 8, 640>}, {transform_indices = @transform_11, window_bounds = array<i64: 8, 256>}]} {
    %c0 = arith.constant 0 : index
    %c0_0 = arith.constant 0 : index
    %0 = vector.load %arg1[%c0, %c0_0] : memref<8x640xf32, #tpu.memory_space<vmem>>, vector<8x640xf32>
    %1 = arith.truncf %0 : vector<8x640xf32> to vector<8x640xbf16>
    %c0_1 = arith.constant 0 : index
    %c0_2 = arith.constant 0 : index
    %2 = vector.load %arg2[%c0_1, %c0_2] : memref<640x256xbf16, #tpu.memory_space<vmem>>, vector<640x256xbf16>
    %cst = arith.constant dense<0.000000e+00> : vector<8x256xf32>
    %3 = tpu.matmul %1, %2, %cst {dimension_numbers = #tpu.dot_dimension_numbers<[1], [0], [0], [1], [0, 0, 1, 1], [], []>} : vector<8x640xbf16>, vector<640x256xbf16>, vector<8x256xf32> -> vector<8x256xf32>
    %c0_3 = arith.constant 0 : index
    %c0_4 = arith.constant 0 : index
    %4 = vector.load %arg3[%c0_3, %c0_4] : memref<1x256xf32, #tpu.memory_space<vmem>>, vector<1x256xf32>
    %5 = vector.broadcast %4 : vector<1x256xf32> to vector<8x256xf32>
    %6 = arith.addf %3, %5 : vector<8x256xf32>
    %cst_5 = arith.constant 0.000000e+00 : f32
    %7 = vector.broadcast %cst_5 : f32 to vector<8x256xf32>
    %8 = arith.maximumf %6, %7 : vector<8x256xf32>
    %9 = arith.truncf %8 : vector<8x256xf32> to vector<8x256xbf16>
    %c0_6 = arith.constant 0 : index
    %c0_7 = arith.constant 0 : index
    %10 = vector.load %arg4[%c0_6, %c0_7] : memref<256x256xbf16, #tpu.memory_space<vmem>>, vector<256x256xbf16>
    %cst_8 = arith.constant dense<0.000000e+00> : vector<8x256xf32>
    %11 = tpu.matmul %9, %10, %cst_8 {dimension_numbers = #tpu.dot_dimension_numbers<[1], [0], [0], [1], [0, 0, 1, 1], [], []>} : vector<8x256xbf16>, vector<256x256xbf16>, vector<8x256xf32> -> vector<8x256xf32>
    %c0_9 = arith.constant 0 : index
    %c0_10 = arith.constant 0 : index
    %12 = vector.load %arg5[%c0_9, %c0_10] : memref<1x256xf32, #tpu.memory_space<vmem>>, vector<1x256xf32>
    %13 = vector.broadcast %12 : vector<1x256xf32> to vector<8x256xf32>
    %14 = arith.addf %11, %13 : vector<8x256xf32>
    %c0_11 = arith.constant 0 : index
    %c0_12 = arith.constant 0 : index
    %15 = vector.load %arg12[%c0_11, %c0_12] : memref<8x256xf32, #tpu.memory_space<vmem>>, vector<8x256xf32>
    tpu.vector_store %arg12[%c0_11, %c0_12], %14 {strides = array<i32>} : memref<8x256xf32, #tpu.memory_space<vmem>>, vector<8x256xf32>,
    %16 = vector.extract_strided_slice %14 {offsets = [0, 0], sizes = [8, 128], strides = [1, 1]} : vector<8x256xf32> to vector<8x128xf32>
    %17 = vector.extract_strided_slice %14 {offsets = [0, 128], sizes = [8, 128], strides = [1, 1]} : vector<8x256xf32> to vector<8x128xf32>
    %cst_13 = arith.constant 5.000000e-01 : f32
    %18 = vector.broadcast %cst_13 : f32 to vector<8x128xf32>
    %19 = arith.mulf %18, %17 : vector<8x128xf32>
    %20 = math.exp %19 : vector<8x128xf32>
    %c0_14 = arith.constant 0 : index
    %c0_15 = arith.constant 0 : index
    %21 = vector.load %arg10[%c0_14, %c0_15] : memref<8x128xf32, #tpu.memory_space<vmem>>, vector<8x128xf32>
    %22 = arith.mulf %21, %20 : vector<8x128xf32>
    %23 = arith.addf %22, %16 : vector<8x128xf32>
    %24 = arith.truncf %23 : vector<8x128xf32> to vector<8x128xbf16>
    %c0_16 = arith.constant 0 : index
    %c0_17 = arith.constant 0 : index
    %25 = vector.load %arg6[%c0_16, %c0_17] : memref<128x256xbf16, #tpu.memory_space<vmem>>, vector<128x256xbf16>
    %cst_18 = arith.constant dense<0.000000e+00> : vector<8x256xf32>
    %26 = tpu.matmul %24, %25, %cst_18 {dimension_numbers = #tpu.dot_dimension_numbers<[1], [0], [0], [1], [0, 0, 1, 1], [], []>} : vector<8x128xbf16>, vector<128x256xbf16>, vector<8x256xf32> -> vector<8x256xf32>
    %c0_19 = arith.constant 0 : index
    %c0_20 = arith.constant 0 : index
    %27 = vector.load %arg7[%c0_19, %c0_20] : memref<1x256xf32, #tpu.memory_space<vmem>>, vector<1x256xf32>
    %28 = vector.broadcast %27 : vector<1x256xf32> to vector<8x256xf32>
    %29 = arith.addf %26, %28 : vector<8x256xf32>
    %cst_21 = arith.constant 0.000000e+00 : f32
    %30 = vector.broadcast %cst_21 : f32 to vector<8x256xf32>
    %31 = arith.maximumf %29, %30 : vector<8x256xf32>
    %32 = arith.truncf %31 : vector<8x256xf32> to vector<8x256xbf16>
    %c0_22 = arith.constant 0 : index
    %c0_23 = arith.constant 0 : index
    %33 = vector.load %arg8[%c0_22, %c0_23] : memref<256x640xbf16, #tpu.memory_space<vmem>>, vector<256x640xbf16>
    %cst_24 = arith.constant dense<0.000000e+00> : vector<8x640xf32>
    %34 = tpu.matmul %32, %33, %cst_24 {dimension_numbers = #tpu.dot_dimension_numbers<[1], [0], [0], [1], [0, 0, 1, 1], [], []>} : vector<8x256xbf16>, vector<256x640xbf16>, vector<8x640xf32> -> vector<8x640xf32>
    %c0_25 = arith.constant 0 : index
    %c0_26 = arith.constant 0 : index
    %35 = vector.load %arg9[%c0_25, %c0_26] : memref<1x640xf32, #tpu.memory_space<vmem>>, vector<1x640xf32>
    %36 = vector.broadcast %35 : vector<1x640xf32> to vector<8x640xf32>
    %37 = arith.addf %34, %36 : vector<8x640xf32>
    %cst_27 = arith.constant 0.000000e+00 : f32
    %38 = vector.broadcast %cst_27 : f32 to vector<8x640xf32>
    %39 = arith.subf %38, %37 : vector<8x640xf32>
    %40 = math.exp %39 : vector<8x640xf32>
    %cst_28 = arith.constant 1.000000e+00 : f32
    %41 = vector.broadcast %cst_28 : f32 to vector<8x640xf32>
    %42 = arith.addf %41, %40 : vector<8x640xf32>
    %43 = tpu.reciprocal %42 {approx = true} : vector<8x640xf32> -> vector<8x640xf32>
    %cst_29 = arith.constant 0.000000e+00 : f32
    %cst_30 = arith.constant 1.000000e+00 : f32
    %44 = vector.broadcast %cst_29 : f32 to vector<8x640xf32>
    %45 = arith.maximumf %44, %43 : vector<8x640xf32>
    %46 = vector.broadcast %cst_30 : f32 to vector<8x640xf32>
    %47 = arith.minimumf %46, %45 : vector<8x640xf32>
    %c0_31 = arith.constant 0 : index
    %c0_32 = arith.constant 0 : index
    %48 = vector.load %arg11[%c0_31, %c0_32] : memref<8x640xf32, #tpu.memory_space<vmem>>, vector<8x640xf32>
    tpu.vector_store %arg11[%c0_31, %c0_32], %47 {strides = array<i32>} : memref<8x640xf32, #tpu.memory_space<vmem>>, vector<8x640xf32>,
    return
  }
  func.func @transform_0(%arg0: i32) -> (i32, i32) {
    %c0_i32 = arith.constant 0 : i32
    %c0_i32_0 = arith.constant 0 : i32
    return %arg0, %c0_i32 : i32, i32
  }
  func.func @transform_1(%arg0: i32) -> (i32, i32) {
    %c0_i32 = arith.constant 0 : i32
    %c0_i32_0 = arith.constant 0 : i32
    %c0_i32_1 = arith.constant 0 : i32
    return %c0_i32, %c0_i32_0 : i32, i32
  }
  func.func @transform_2(%arg0: i32) -> (i32, i32) {
    %c0_i32 = arith.constant 0 : i32
    %c0_i32_0 = arith.constant 0 : i32
    %c0_i32_1 = arith.constant 0 : i32
    return %c0_i32, %c0_i32_0 : i32, i32
  }
  func.func @transform_3(%arg0: i32) -> (i32, i32) {
    %c0_i32 = arith.constant 0 : i32
    %c0_i32_0 = arith.constant 0 : i32
    %c0_i32_1 = arith.constant 0 : i32
    return %c0_i32, %c0_i32_0 : i32, i32
  }
  func.func @transform_4(%arg0: i32) -> (i32, i32) {
    %c0_i32 = arith.constant 0 : i32
    %c0_i32_0 = arith.constant 0 : i32
    %c0_i32_1 = arith.constant 0 : i32
    return %c0_i32, %c0_i32_0 : i32, i32
  }
  func.func @transform_5(%arg0: i32) -> (i32, i32) {
    %c0_i32 = arith.constant 0 : i32
    %c0_i32_0 = arith.constant 0 : i32
    %c0_i32_1 = arith.constant 0 : i32
    return %c0_i32, %c0_i32_0 : i32, i32
  }
  func.func @transform_6(%arg0: i32) -> (i32, i32) {
    %c0_i32 = arith.constant 0 : i32
    %c0_i32_0 = arith.constant 0 : i32
    %c0_i32_1 = arith.constant 0 : i32
    return %c0_i32, %c0_i32_0 : i32, i32
  }
  func.func @transform_7(%arg0: i32) -> (i32, i32) {
    %c0_i32 = arith.constant 0 : i32
    %c0_i32_0 = arith.constant 0 : i32
    %c0_i32_1 = arith.constant 0 : i32
    return %c0_i32, %c0_i32_0 : i32, i32
  }
  func.func @transform_8(%arg0: i32) -> (i32, i32) {
    %c0_i32 = arith.constant 0 : i32
    %c0_i32_0 = arith.constant 0 : i32
    %c0_i32_1 = arith.constant 0 : i32
    return %c0_i32, %c0_i32_0 : i32, i32
  }
  func.func @transform_9(%arg0: i32) -> (i32, i32) {
    %c0_i32 = arith.constant 0 : i32
    %c0_i32_0 = arith.constant 0 : i32
    return %arg0, %c0_i32 : i32, i32
  }
  func.func @transform_10(%arg0: i32) -> (i32, i32) {
    %c0_i32 = arith.constant 0 : i32
    %c0_i32_0 = arith.constant 0 : i32
    return %arg0, %c0_i32 : i32, i32
  }
  func.func @transform_11(%arg0: i32) -> (i32, i32) {
    %c0_i32 = arith.constant 0 : i32
    %c0_i32_0 = arith.constant 0 : i32
    return %arg0, %c0_i32 : i32, i32
  }
}

</mosaic_0001>

<bundles_post_ra>
// kernel: vae_forward.1
= control target key start
LH: loop header
LB: loop body
LE: loop exit
PB: predicated region body
PF: predicated region fallthrough
CT: control target
= control target key end

     0   :  { %17 = vsyncpa [#allocation3], 0  ;;  %s2874_s0 = inlined_call_operand.vmem [shape: f32[8,640], index: 0, kind: input, shape index: {}]   ;;  %s2875_s1 = inlined_call_operand.vmem [shape: bf16[640,256], index: 1, kind: input, shape index: {}]   ;;  %s2876_s2 = inlined_call_operand.vmem [shape: f32[1,256], index: 2, kind: input, shape index: {}]   ;;  %s2877_s3 = inlined_call_operand.hbm [shape: bf16[256,256], index: 3, kind: input, shape index: {}]   ;;  %s2878_s4 = inlined_call_operand.vmem [shape: f32[1,256], index: 4, kind: input, shape index: {}]   ;;  %s2879_s5 = inlined_call_operand.vmem [shape: bf16[128,256], index: 5, kind: input, shape index: {}]   ;;  %s2880_s6 = inlined_call_operand.vmem [shape: f32[1,256], index: 6, kind: input, shape index: {}]   ;;  %s2881_s7 = inlined_call_operand.hbm [shape: bf16[256,640], index: 7, kind: input, shape index: {}]   ;;  %s2882_s8 = inlined_call_operand.vmem [shape: f32[1,640], index: 8, kind: input, shape index: {}]   ;;  %s2883_s9 = inlined_call_operand.vmem [shape: f32[8,128], index: 9, kind: input, shape index: {}]   ;;  %s2884_s10 = inlined_call_operand.hbm [shape: f32[8,640], index: 10, kind: output, shape index: {0}]   ;;  %s2885_s11 = inlined_call_operand.vmem [shape: f32[8,256], index: 11, kind: output, shape index: {1}]  }
   0x1   :  { %18 = vsyncpa [#allocation6], 0 }
   0x2   :  { %19 = vsyncpa [#allocation4], 0  ;;  %s2454_s17 = smov [#allocation2]  }
   0x3   :  { %s31_s18 = sshll.u32 %s2454_s17, 4  ;;  %s32_s18 = int_to_ptr.vmem [resolvable:$true] %s31_s18 }
   0x4   :  { %s2396_s19 = scalar_lea.vmem %s32_s18, 4096  ;;  %p2401_p1 = scmp.lt.s32.totalorder %s32_s18, %s32_s18 }
   0x5   :  { %p2397_p0 = scmp.ne.s32.totalorder %s32_s18, %s2396_s19  ;;  %p2402_p2 = scmp.lt.s32.totalorder %s2396_s19, %s2396_s19 }
   0x7   :  { %p2403_p3 = por %p2402_p2, %p2401_p1 }
   0x9   :  { %p2404_p4 = pnand %p2403_p3, %p2397_p0 }
   0xb   :  { %2407 = shalt.err (!%p2404_p4)
}
   0xc   :  { %s2455_s20 = smov 128   ;;  %s2456_s21 = smov 8  }
   0xd   :  { %37 = dma.hbm_to_vmem [thread:$0]  %s2877_s3, 4096, %s32_s18, [#allocation3], %s2455_s20, %s2455_s20, %s2456_s21  }
   0xe   :  { %s2457_s24 = smov [#allocation5]  }
   0xf   :  { %s49_s25 = sshll.u32 %s2457_s24, 4  ;;  %s50_s25 = int_to_ptr.vmem [resolvable:$true] %s49_s25 }
  0x10   :  { %s2416_s26 = scalar_lea.vmem %s50_s25, 10240  ;;  %p2421_p6 = scmp.lt.s32.totalorder %s50_s25, %s50_s25 }
  0x11   :  { %p2417_p5 = scmp.ne.s32.totalorder %s50_s25, %s2416_s26  ;;  %p2422_p7 = scmp.lt.s32.totalorder %s2416_s26, %s2416_s26 }
  0x13   :  { %p2423_p8 = por %p2422_p7, %p2421_p6 }
  0x15   :  { %p2424_p9 = pnand %p2423_p8, %p2417_p5 }
  0x17   :  { %2427 = shalt.err (!%p2424_p9)
}
  0x18   :  { %s2458_s27 = smov 320   ;;  %s2459_s28 = smov 20  }
  0x19   :  { %55 = dma.hbm_to_vmem [thread:$0]  %s2881_s7, 10240, %s50_s25, [#allocation6], %s2458_s27, %s2458_s27, %s2459_s28  }
  0x1a   :  { %2448 = dma.done.wait [#allocation3], 4096  }
  0x1b   :  { %2449 = vsyncadd [#allocation3], 4294963200 }
  0x1c   :  { %2450 = dma.done.wait [#allocation6], 10240  }
  0x1d   :  { %2451 = vsyncadd [#allocation6], 4294957056  ;;  %v2062_v0 = vld [vmem:[%s2875_s1 + $0x74] ss:$8 sps:$4 sm:$0xff]   ;;  %v2064_v1 = vld [vmem:[%s2875_s1 + $0x70] ss:$8 sps:$4 sm:$0xff]  }
  0x1e   :  { %569 = vmatprep.subr.bf16.mxu0 %v2062_v0  ;;  %v2065_v2 = vld [vmem:[%s2875_s1 + $0x174] ss:$8 sps:$4 sm:$0xff]   ;;  %v2067_v3 = vld [vmem:[%s2875_s1 + $0x170] ss:$8 sps:$4 sm:$0xff]   ;;  %v2068_v4 = vld [vmem:[%s2875_s1 + $0x64] ss:$8 sps:$4 sm:$0xff]  }
  0x1f   :  { %570 = vmatpush1.bf16.msra.mxu0 %v2064_v1  ;;  %v2070_v5 = vld [vmem:[%s2875_s1 + $0x60] ss:$8 sps:$4 sm:$0xff]   ;;  %610 = vmatprep.subr.bf16.mxu1 %v2065_v2  ;;  %v2071_v6 = vld [vmem:[%s2875_s1 + $0x164] ss:$8 sps:$4 sm:$0xff]   ;;  %v2074_v8 = vld [vmem:[%s2875_s1 + $0x54] ss:$8 sps:$4 sm:$0xff]  }
  0x20   :  { %611 = vmatpush1.bf16.msra.mxu1 %v2067_v3  ;;  %571 = vmatprep.subr.bf16.mxu0 %v2068_v4  ;;  %v2073_v7 = vld [vmem:[%s2875_s1 + $0x160] ss:$8 sps:$4 sm:$0xff]   ;;  %v2076_v9 = vld [vmem:[%s2875_s1 + $0x50] ss:$8 sps:$4 sm:$0xff]   ;;  %v2077_v10 = vld [vmem:[%s2875_s1 + $0x154] ss:$8 sps:$4 sm:$0xff]  }
  0x21   :  { %612 = vmatprep.subr.bf16.mxu1 %v2071_v6  ;;  %v2080_v11 = vld [vmem:[%s2875_s1 + $0x44] ss:$8 sps:$4 sm:$0xff]   ;;  %v2079_v12 = vld [vmem:[%s2875_s1 + $0x150] ss:$8 sps:$4 sm:$0xff]   ;;  %v2082_v14 = vld [vmem:[%s2875_s1 + $0x40] ss:$8 sps:$4 sm:$0xff]  }
  0x22   :  { %v2083_v13 = vld [vmem:[%s2875_s1 + $0x144] ss:$8 sps:$4 sm:$0xff]   ;;  %v2086_v15 = vld [vmem:[%s2875_s1 + $0x34] ss:$8 sps:$4 sm:$0xff]   ;;  %v2085_v16 = vld [vmem:[%s2875_s1 + $0x140] ss:$8 sps:$4 sm:$0xff]  }
  0x23   :  { %572 = vmatpush1.bf16.msra.mxu0 %v2070_v5  ;;  %v2089_v17 = vld [vmem:[%s2875_s1 + $0x134] ss:$8 sps:$4 sm:$0xff]   ;;  %v2088_v18 = vld [vmem:[%s2875_s1 + $0x30] ss:$8 sps:$4 sm:$0xff]   ;;  %v2092_v19 = vld [vmem:[%s2875_s1 + $0x24] ss:$8 sps:$4 sm:$0xff]  }
  0x24   :  { %573 = vmatprep.subr.bf16.mxu0 %v2074_v8  ;;  %613 = vmatpush1.bf16.msra.mxu1 %v2073_v7  ;;  %v2091_v20 = vld [vmem:[%s2875_s1 + $0x130] ss:$8 sps:$4 sm:$0xff]   ;;  %v2095_v21 = vld [vmem:[%s2875_s1 + $0x124] ss:$8 sps:$4 sm:$0xff]   ;;  %v2094_v22 = vld [vmem:[%s2875_s1 + $0x20] ss:$8 sps:$4 sm:$0xff]  }
  0x25   :  { %614 = vmatprep.subr.bf16.mxu1 %v2077_v10  ;;  %v2098_v23 = vld [vmem:[%s2875_s1 + $0x14] ss:$8 sps:$4 sm:$0xff]   ;;  %v2097_v24 = vld [vmem:[%s2875_s1 + $0x120] ss:$8 sps:$4 sm:$0xff]   ;;  %v2100_v26 = vld [vmem:[%s2875_s1 + $0x10] ss:$8 sps:$4 sm:$0xff]  }
  0x26   :  { %v2101_v25 = vld [vmem:[%s2875_s1 + $0x114] ss:$8 sps:$4 sm:$0xff]   ;;  %v2104_v27 = vld [vmem:[%s2875_s1 + $0x4] ss:$8 sps:$4 sm:$0xff]   ;;  %v2103_v28 = vld [vmem:[%s2875_s1 + $0x110] ss:$8 sps:$4 sm:$0xff]  }
  0x27   :  { %574 = vmatpush1.bf16.msra.mxu0 %v2076_v9  ;;  %v2107_v29 = vld [vmem:[%s2875_s1 + $0x104] ss:$8 sps:$4 sm:$0xff]   ;;  %v2106_v30 = vld [vmem:[%s2875_s1] ss:$8 sps:$4 sm:$0xff]   ;;  %v2110_v31 = vld [vmem:[%s2875_s1 + $0xf4] ss:$8 sps:$4 sm:$0xff]  }
  0x28   :  { %575 = vmatprep.subr.bf16.mxu0 %v2080_v11  ;;  %615 = vmatpush1.bf16.msra.mxu1 %v2079_v12  ;;  %v2109_v32 = vld [vmem:[%s2875_s1 + $0x100] ss:$8 sps:$4 sm:$0xff]   ;;  %v2113_v33 = vld [vmem:[%s2875_s1 + $0x1f4] ss:$8 sps:$4 sm:$0xff]   ;;  %v2112_v34 = vld [vmem:[%s2875_s1 + $0xf0] ss:$8 sps:$4 sm:$0xff]  }
  0x29   :  { %616 = vmatprep.subr.bf16.mxu1 %v2083_v13  ;;  %v2116_v35 = vld [vmem:[%s2875_s1 + $0xe4] ss:$8 sps:$4 sm:$0xff]   ;;  %v2115_v36 = vld [vmem:[%s2875_s1 + $0x1f0] ss:$8 sps:$4 sm:$0xff]   ;;  %v2118_v38 = vld [vmem:[%s2875_s1 + $0xe0] ss:$8 sps:$4 sm:$0xff]  }
  0x2a   :  { %v2119_v37 = vld [vmem:[%s2875_s1 + $0x1e4] ss:$8 sps:$4 sm:$0xff]   ;;  %v2122_v39 = vld [vmem:[%s2875_s1 + $0xd4] ss:$8 sps:$4 sm:$0xff]   ;;  %v2121_v40 = vld [vmem:[%s2875_s1 + $0x1e0] ss:$8 sps:$4 sm:$0xff]  }
  0x2b   :  { %576 = vmatpush1.bf16.msra.mxu0 %v2082_v14  ;;  %v2125_v41 = vld [vmem:[%s2875_s1 + $0x1d4] ss:$8 sps:$4 sm:$0xff]   ;;  %v2124_v42 = vld [vmem:[%s2875_s1 + $0xd0] ss:$8 sps:$4 sm:$0xff]   ;;  %v2128_v43 = vld [vmem:[%s2875_s1 + $0xc4] ss:$8 sps:$4 sm:$0xff]  }
  0x2c   :  { %577 = vmatprep.subr.bf16.mxu0 %v2086_v15  ;;  %617 = vmatpush1.bf16.msra.mxu1 %v2085_v16  ;;  %v2127_v44 = vld [vmem:[%s2875_s1 + $0x1d0] ss:$8 sps:$4 sm:$0xff]   ;;  %v2131_v45 = vld [vmem:[%s2875_s1 + $0x1c4] ss:$8 sps:$4 sm:$0xff]   ;;  %v2130_v47 = vld [vmem:[%s2875_s1 + $0xc0] ss:$8 sps:$4 sm:$0xff]  }
  0x2d   :  { %618 = vmatprep.subr.bf16.mxu1 %v2089_v17  ;;  %v68_v46 = vld [vmem:[%s2874_s0 + $0x8] sm:$0xff]  ;;  %v2134_v49 = vld [vmem:[%s2875_s1 + $0xb4] ss:$8 sps:$4 sm:$0xff]   ;;  %v2136_v54 = vld [vmem:[%s2875_s1 + $0xb0] ss:$8 sps:$4 sm:$0xff]   ;;  %v2460_v16 = vmov 0  }
  0x2e   :  { %v73_v48 = vpack.c.bf16 %v68_v46, %v68_v46  ;;  %v70_v50 = vld [vmem:[%s2874_s0 + $0x18] sm:$0xff]  ;;  %v2133_v51 = vld [vmem:[%s2875_s1 + $0x1c0] ss:$8 sps:$4 sm:$0xff]   ;;  %v2140_v55 = vld [vmem:[%s2875_s1 + $0xa4] ss:$8 sps:$4 sm:$0xff]  }
  0x2f   :  { %578 = vmatpush1.bf16.msra.mxu0 %v2088_v18  ;;  %v75_v52 = vpack.c.bf16 %v70_v50, %v70_v50  ;;  %v2137_v53 = vld [vmem:[%s2875_s1 + $0x1b4] ss:$8 sps:$4 sm:$0xff]   ;;  %v2139_v56 = vld [vmem:[%s2875_s1 + $0x1b0] ss:$8 sps:$4 sm:$0xff]   ;;  %v2143_v57 = vld [vmem:[%s2875_s1 + $0x1a4] ss:$8 sps:$4 sm:$0xff]  }
  0x30   :  { %579 = vmatprep.subr.bf16.mxu0 %v2092_v19  ;;  %619 = vmatpush1.bf16.msra.mxu1 %v2091_v20  ;;  %v2142_v58 = vld [vmem:[%s2875_s1 + $0xa0] ss:$8 sps:$4 sm:$0xff]   ;;  %v2146_v59 = vld [vmem:[%s2875_s1 + $0x94] ss:$8 sps:$4 sm:$0xff]   ;;  %v2148_v62 = vld [vmem:[%s2875_s1 + $0x90] ss:$8 sps:$4 sm:$0xff]  }
  0x31   :  { %620 = vmatprep.subr.bf16.mxu1 %v2095_v21  ;;  %601 = vmatprep.mubr.bf16.mxu0 %v73_v48  ;;  %v2145_v60 = vld [vmem:[%s2875_s1 + $0x1a0] ss:$8 sps:$4 sm:$0xff]   ;;  %v2149_v61 = vld [vmem:[%s2875_s1 + $0x194] ss:$8 sps:$4 sm:$0xff]   ;;  %v2152_v63 = vld [vmem:[%s2875_s1 + $0x84] ss:$8 sps:$4 sm:$0xff]  }
  0x32   :  { %642 = vmatprep.mubr.bf16.mxu1 %v75_v52  ;;  %v2151_v0 = vld [vmem:[%s2875_s1 + $0x190] ss:$8 sps:$4 sm:$0xff]   ;;  %v2154_v1 = vld [vmem:[%s2875_s1 + $0x80] ss:$8 sps:$4 sm:$0xff]   ;;  %v2155_v2 = vld [vmem:[%s2875_s1 + $0x184] ss:$8 sps:$4 sm:$0xff]  }
  0x33   :  { %580 = vmatpush1.bf16.msra.mxu0 %v2094_v22  ;;  %v2157_v3 = vld [vmem:[%s2875_s1 + $0x180] ss:$8 sps:$4 sm:$0xff]   ;;  %v2160_v5 = vld [vmem:[%s2875_s1 + $0x274] ss:$8 sps:$4 sm:$0xff]   ;;  %v2158_v6 = vld [vmem:[%s2875_s1 + $0x270] ss:$8 sps:$4 sm:$0xff]  }
  0x34   :  { %581 = vmatprep.subr.bf16.mxu0 %v2098_v23  ;;  %621 = vmatpush1.bf16.msra.mxu1 %v2097_v24  ;;  %v67_v4 = vld [vmem:[%s2874_s0] sm:$0xff]  ;;  %v69_v7 = vld [vmem:[%s2874_s0 + $0x10] sm:$0xff] }
  0x35   :  { %622 = vmatprep.subr.bf16.mxu1 %v2101_v25  ;;  %v72_v8 = vpack.c.bf16 %v67_v4, %v67_v4  ;;  %v2163_v9 = vld [vmem:[%s2875_s1 + $0x264] ss:$8 sps:$4 sm:$0xff]   ;;  %v2184_v10 = vld [vmem:[#allocation2 + $0x74] ss:$8 sps:$4 sm:$0xff]   ;;  %v2182_v11 = vld [vmem:[#allocation2 + $0x70] ss:$8 sps:$4 sm:$0xff]   ;;  %v74_v12 = vpack.c.bf16 %v69_v7, %v69_v7 }
  0x36   :  { %v2187_v13 = vld [vmem:[#allocation2 + $0x64] ss:$8 sps:$4 sm:$0xff]   ;;  %v2161_v14 = vld [vmem:[%s2875_s1 + $0x260] ss:$8 sps:$4 sm:$0xff]   ;;  %v2166_v15 = vld [vmem:[%s2875_s1 + $0x254] ss:$8 sps:$4 sm:$0xff]  }
  0x37   :  { %582 = vmatpush1.bf16.msra.mxu0 %v2100_v26  ;;  %v2185_v17 = vld [vmem:[#allocation2 + $0x60] ss:$8 sps:$4 sm:$0xff]   ;;  %v2190_v18 = vld [vmem:[#allocation2 + $0x54] ss:$8 sps:$4 sm:$0xff]   ;;  %v2164_v19 = vld [vmem:[%s2875_s1 + $0x250] ss:$8 sps:$4 sm:$0xff]  }
  0x38   :  { %583 = vmatprep.subr.bf16.mxu0 %v2104_v27  ;;  %623 = vmatpush1.bf16.msra.mxu1 %v2103_v28  ;;  %v2169_v20 = vld [vmem:[%s2875_s1 + $0x244] ss:$8 sps:$4 sm:$0xff]   ;;  %v2188_v21 = vld [vmem:[#allocation2 + $0x50] ss:$8 sps:$4 sm:$0xff]   ;;  %v2167_v23 = vld [vmem:[%s2875_s1 + $0x240] ss:$8 sps:$4 sm:$0xff]  }
  0x39   :  { %624 = vmatprep.subr.bf16.mxu1 %v2107_v29  ;;  %v2193_v22 = vld [vmem:[#allocation2 + $0x44] ss:$8 sps:$4 sm:$0xff]   ;;  %v2172_v24 = vld [vmem:[%s2875_s1 + $0x234] ss:$8 sps:$4 sm:$0xff]   ;;  %v2191_v25 = vld [vmem:[#allocation2 + $0x40] ss:$8 sps:$4 sm:$0xff]  }
  0x3a   :  { %v2196_v26 = vld [vmem:[#allocation2 + $0x34] ss:$8 sps:$4 sm:$0xff]   ;;  %v2170_v27 = vld [vmem:[%s2875_s1 + $0x230] ss:$8 sps:$4 sm:$0xff]   ;;  %v2175_v28 = vld [vmem:[%s2875_s1 + $0x224] ss:$8 sps:$4 sm:$0xff]  }
  0x3b   :  { %584 = vmatpush1.bf16.msra.mxu0 %v2106_v30  ;;  %v2194_v29 = vld [vmem:[#allocation2 + $0x30] ss:$8 sps:$4 sm:$0xff]   ;;  %v2199_v30 = vld [vmem:[#allocation2 + $0x24] ss:$8 sps:$4 sm:$0xff]   ;;  %v2209_v46 = vld [vmem:[#allocation2 + $0xe0] ss:$8 sps:$4 sm:$0xff]  }
  0x3c   :  { %585 = vmatprep.subr.bf16.mxu0 %v2110_v31  ;;  %625 = vmatpush1.bf16.msra.mxu1 %v2109_v32  ;;  %v2173_v31 = vld [vmem:[%s2875_s1 + $0x220] ss:$8 sps:$4 sm:$0xff]   ;;  %v2178_v32 = vld [vmem:[%s2875_s1 + $0x214] ss:$8 sps:$4 sm:$0xff]   ;;  %v2212_v48 = vld [vmem:[#allocation2 + $0xd0] ss:$8 sps:$4 sm:$0xff]  }
  0x3d   :  { %626 = vmatprep.subr.bf16.mxu1 %v2113_v33  ;;  %v2197_v33 = vld [vmem:[#allocation2 + $0x20] ss:$8 sps:$4 sm:$0xff]   ;;  %v2218_v52 = vld [vmem:[#allocation2 + $0xb0] ss:$8 sps:$4 sm:$0xff]  }
  0x3e   :  { %v2215_v50 = vld [vmem:[#allocation2 + $0xc0] ss:$8 sps:$4 sm:$0xff]  }
  0x3f   :  { %586 = vmatpush2.bf16.msra.mxu0 %v2112_v34  ;;  %v2176_v34 = vld [vmem:[%s2875_s1 + $0x210] ss:$8 sps:$4 sm:$0xff]  }
  0x40   :  { %587 = vmatprep.subr.bf16.mxu0 %v2116_v35  ;;  %627 = vmatpush2.bf16.msra.mxu1 %v2115_v36  ;;  %v2181_v35 = vld [vmem:[%s2875_s1 + $0x204] ss:$8 sps:$4 sm:$0xff]   ;;  %v2179_v36 = vld [vmem:[%s2875_s1 + $0x200] ss:$8 sps:$4 sm:$0xff]  }
  0x41   :  { %628 = vmatprep.subr.bf16.mxu1 %v2119_v37  ;;  %v71_v37 = vld [vmem:[%s2874_s0 + $0x20] sm:$0xff] }
  0x43   :  { %588 = vmatpush2.bf16.msra.mxu0 %v2118_v38  ;;  %v76_v38 = vpack.c.bf16 %v71_v37, %v71_v37  ;;  %v2248_v37 = vld [vmem:[%s2879_s5 + $0x10] ss:$8 sps:$4 sm:$0xff]  }
  0x44   :  { %589 = vmatprep.subr.bf16.mxu0 %v2122_v39  ;;  %629 = vmatpush2.bf16.msra.mxu1 %v2121_v40  ;;  %v2202_v39 = vld [vmem:[#allocation2 + $0x14] ss:$8 sps:$4 sm:$0xff]   ;;  %v2200_v40 = vld [vmem:[#allocation2 + $0x10] ss:$8 sps:$4 sm:$0xff]  }
  0x45   :  { %630 = vmatprep.subr.bf16.mxu1 %v2125_v41  ;;  %v2205_v41 = vld [vmem:[#allocation2 + $0x4] ss:$8 sps:$4 sm:$0xff]  }
  0x47   :  { %590 = vmatpush2.bf16.msra.mxu0 %v2124_v42  ;;  %v2203_v42 = vld [vmem:[#allocation2] ss:$8 sps:$4 sm:$0xff]  }
  0x48   :  { %591 = vmatprep.subr.bf16.mxu0 %v2128_v43  ;;  %631 = vmatpush2.bf16.msra.mxu1 %v2127_v44  ;;  %v2208_v43 = vld [vmem:[#allocation2 + $0xf4] ss:$8 sps:$4 sm:$0xff]   ;;  %v2206_v44 = vld [vmem:[#allocation2 + $0xf0] ss:$8 sps:$4 sm:$0xff]  }
  0x49   :  { %632 = vmatprep.subr.bf16.mxu1 %v2131_v45  ;;  %v2211_v45 = vld [vmem:[#allocation2 + $0xe4] ss:$8 sps:$4 sm:$0xff]  }
  0x4b   :  { %592 = vmatpush2.bf16.msra.mxu0 %v2130_v47  ;;  %v2214_v47 = vld [vmem:[#allocation2 + $0xd4] ss:$8 sps:$4 sm:$0xff]  }
  0x4c   :  { %593 = vmatprep.subr.bf16.mxu0 %v2134_v49  ;;  %633 = vmatpush2.bf16.msra.mxu1 %v2133_v51  ;;  %v2217_v49 = vld [vmem:[#allocation2 + $0xc4] ss:$8 sps:$4 sm:$0xff]   ;;  %v2220_v51 = vld [vmem:[#allocation2 + $0xb4] ss:$8 sps:$4 sm:$0xff]  }
  0x4d   :  { %634 = vmatprep.subr.bf16.mxu1 %v2137_v53  ;;  %v2223_v53 = vld [vmem:[#allocation2 + $0xa4] ss:$8 sps:$4 sm:$0xff]  }
  0x4f   :  { %594 = vmatpush2.bf16.msra.mxu0 %v2136_v54  ;;  %v2221_v54 = vld [vmem:[#allocation2 + $0xa0] ss:$8 sps:$4 sm:$0xff]  }
  0x50   :  { %595 = vmatprep.subr.bf16.mxu0 %v2140_v55  ;;  %635 = vmatpush2.bf16.msra.mxu1 %v2139_v56  ;;  %v2226_v55 = vld [vmem:[#allocation2 + $0x94] ss:$8 sps:$4 sm:$0xff]   ;;  %v2224_v56 = vld [vmem:[#allocation2 + $0x90] ss:$8 sps:$4 sm:$0xff]  }
  0x51   :  { %636 = vmatprep.subr.bf16.mxu1 %v2143_v57  ;;  %v2229_v57 = vld [vmem:[#allocation2 + $0x84] ss:$8 sps:$4 sm:$0xff]  }
  0x53   :  { %596 = vmatpush2.bf16.msra.mxu0 %v2142_v58  ;;  %v2227_v58 = vld [vmem:[#allocation2 + $0x80] ss:$8 sps:$4 sm:$0xff]  }
  0x54   :  { %597 = vmatprep.subr.bf16.mxu0 %v2146_v59  ;;  %637 = vmatpush2.bf16.msra.mxu1 %v2145_v60  ;;  %v2230_v59 = vld [vmem:[%s2879_s5 + $0x70] ss:$8 sps:$4 sm:$0xff]   ;;  %v2232_v60 = vld [vmem:[%s2879_s5 + $0x74] ss:$8 sps:$4 sm:$0xff]  }
  0x55   :  { %638 = vmatprep.subr.bf16.mxu1 %v2149_v61 }
  0x57   :  { %598 = vmatpush2.bf16.msra.mxu0 %v2148_v62 }
  0x58   :  { %599 = vmatprep.subr.bf16.mxu0 %v2152_v63  ;;  %639 = vmatpush2.bf16.msra.mxu1 %v2151_v0 }
  0x59   :  { %640 = vmatprep.subr.bf16.mxu1 %v2155_v2 }
  0x5b   :  { %600 = vmatpush2.bf16.msra.mxu0 %v2154_v1 }
  0x5c   :  { %651 = vmatprep.subr.bf16.mxu0 %v2160_v5  ;;  %641 = vmatpush2.bf16.msra.mxu1 %v2157_v3  ;;  %v159_v5 = vlaneseq }
  0x5d   :  { %900 = vmatprep.subr.bf16.mxu1 %v2184_v10 }
  0x5e   :  { %602 = vmatmul.mubr.bf16.vlgmr.msra.gmra.mxu0 %v72_v8  ;;  %v157_v8 = vld [vmem:[%s2876_s2] sm:$0x3] }
  0x5f   :  { %652 = vmatpush1.bf16.msra.mxu0 %v2158_v6  ;;  %683 = vmatprep.mubr.bf16.mxu0 %v2460_v16  ;;  %v2789_v6 = vshrl.u32 %v159_v5, 7  ;;  %v728_v5 = vld [vmem:[%s2878_s4] sm:$0x3] }
  0x60   :  { %643 = vmatmul.mubr.bf16.vlgmr.msra.gmra.mxu1 %v74_v12  ;;  %653 = vmatprep.subr.bf16.mxu0 %v2163_v9 }
  0x61   :  { %901 = vmatpush1.bf16.msra.mxu1 %v2182_v11  ;;  %v2792_v7 = vsub.s32 0, %v2789_v6  ;;  %v2798_v9 = vsub.s32 1, %v2789_v6 }
  0x62   :  { %902 = vmatprep.subr.bf16.mxu1 %v2187_v13 }
  0x63   :  { %654 = vmatpush1.bf16.msra.mxu0 %v2161_v14  ;;  %v162_v10 = vrot.slane %v157_v8, %v2792_v7  ;;  %v166_v11 = vrot.slane %v157_v8, %v2798_v9  ;;  %v733_v8 = vrot.slane %v728_v5, %v2792_v7 }
  0x64   :  { %655 = vmatprep.subr.bf16.mxu0 %v2166_v15 }
  0x65   :  { %903 = vmatpush1.bf16.msra.mxu1 %v2185_v17 }
  0x66   :  { %904 = vmatprep.subr.bf16.mxu1 %v2190_v18 }
  0x67   :  { %656 = vmatpush1.bf16.msra.mxu0 %v2164_v19 }
  0x68   :  { %657 = vmatprep.subr.bf16.mxu0 %v2169_v20 }
  0x69   :  { %905 = vmatpush1.bf16.msra.mxu1 %v2188_v21 }
  0x6a   :  { %906 = vmatprep.subr.bf16.mxu1 %v2193_v22 }
  0x6b   :  { %658 = vmatpush1.bf16.msra.mxu0 %v2167_v23 }
  0x6c   :  { %659 = vmatprep.subr.bf16.mxu0 %v2172_v24 }
  0x6d   :  { %907 = vmatpush1.bf16.msra.mxu1 %v2191_v25 }
  0x6e   :  { %908 = vmatprep.subr.bf16.mxu1 %v2196_v26  ;;  %v2235_v26 = vld [vmem:[%s2879_s5 + $0x64] ss:$8 sps:$4 sm:$0xff]  }
  0x6f   :  { %660 = vmatpush1.bf16.msra.mxu0 %v2170_v27  ;;  %v2233_v27 = vld [vmem:[%s2879_s5 + $0x60] ss:$8 sps:$4 sm:$0xff]  }
  0x70   :  { %661 = vmatprep.subr.bf16.mxu0 %v2175_v28  ;;  %v2238_v28 = vld [vmem:[%s2879_s5 + $0x54] ss:$8 sps:$4 sm:$0xff]  }
  0x71   :  { %909 = vmatpush1.bf16.msra.mxu1 %v2194_v29  ;;  %v2236_v29 = vld [vmem:[%s2879_s5 + $0x50] ss:$8 sps:$4 sm:$0xff]  }
  0x72   :  { %910 = vmatprep.subr.bf16.mxu1 %v2199_v30  ;;  %v2241_v30 = vld [vmem:[%s2879_s5 + $0x44] ss:$8 sps:$4 sm:$0xff]  }
  0x73   :  { %662 = vmatpush1.bf16.msra.mxu0 %v2173_v31  ;;  %v2239_v31 = vld [vmem:[%s2879_s5 + $0x40] ss:$8 sps:$4 sm:$0xff]  }
  0x74   :  { %663 = vmatprep.subr.bf16.mxu0 %v2178_v32  ;;  %v2244_v32 = vld [vmem:[%s2879_s5 + $0x34] ss:$8 sps:$4 sm:$0xff]  }
  0x75   :  { %911 = vmatpush1.bf16.msra.mxu1 %v2197_v33  ;;  %v2242_v33 = vld [vmem:[%s2879_s5 + $0x30] ss:$8 sps:$4 sm:$0xff]  }
  0x76   :  { %912 = vmatprep.subr.bf16.mxu1 %v2202_v39  ;;  %v2251_v39 = vld [vmem:[%s2879_s5] ss:$8 sps:$4 sm:$0xff]  }
  0x77   :  { %664 = vmatpush1.bf16.msra.mxu0 %v2176_v34  ;;  %v2247_v34 = vld [vmem:[%s2879_s5 + $0x24] ss:$8 sps:$4 sm:$0xff]  }
  0x78   :  { %665 = vmatprep.subr.bf16.mxu0 %v2181_v35  ;;  %v2245_v35 = vld [vmem:[%s2879_s5 + $0x20] ss:$8 sps:$4 sm:$0xff]  }
  0x79   :  { %913 = vmatpush1.bf16.msra.mxu1 %v2200_v40  ;;  %v2256_v40 = vld [vmem:[#allocation5 + $0x11c] ss:$20 sps:$4 sm:$0xff]  }
  0x7a   :  { %914 = vmatprep.subr.bf16.mxu1 %v2205_v41  ;;  %v2257_v41 = vld [vmem:[#allocation5 + $0x120] ss:$20 sps:$4 sm:$0xff]  }
  0x7b   :  { %666 = vmatpush1.bf16.msra.mxu0 %v2179_v36  ;;  %v2250_v36 = vld [vmem:[%s2879_s5 + $0x14] ss:$8 sps:$4 sm:$0xff]  }
  0x7c   :  { %1058 = vmatprep.subr.bf16.mxu0 %v2232_v60  ;;  %v2313_v60 = vld [vmem:[#allocation5 + $0x23c] ss:$20 sps:$4 sm:$0xff]  }
  0x7d   :  { %915 = vmatpush1.bf16.msra.mxu1 %v2203_v42  ;;  %v2259_v42 = vld [vmem:[#allocation5 + $0x124] ss:$20 sps:$4 sm:$0xff]  }
  0x7e   :  { %684 = vmatmul.mubr.bf16.vlgmr.msra.gmra.mxu0 %v76_v38  ;;  %916 = vmatprep.subr.bf16.mxu1 %v2208_v43  ;;  %v2253_v38 = vld [vmem:[%s2879_s5 + $0x4] ss:$8 sps:$4 sm:$0xff]  }
  0x7f   :  { %1090 = vmatprep.mubr.bf16.mxu0 %v2460_v16  ;;  %1059 = vmatpush1.bf16.msra.mxu0 %v2230_v59  ;;  %v2263_v43 = vld [vmem:[#allocation5 + $0xf8] ss:$20 sps:$4 sm:$0xff]  }
  0x80   :  { %1060 = vmatprep.subr.bf16.mxu0 %v2235_v26  ;;  %v2311_v59 = vld [vmem:[#allocation5 + $0x238] ss:$20 sps:$4 sm:$0xff]   ;;  %v2260_v26 = vld [vmem:[#allocation5 + $0xf0] ss:$20 sps:$4 sm:$0xff]  }
  0x81   :  { %917 = vmatpush2.bf16.msra.mxu1 %v2206_v44  ;;  %v2265_v44 = vld [vmem:[#allocation5 + $0xfc] ss:$20 sps:$4 sm:$0xff]  }
  0x82   :  { %918 = vmatprep.subr.bf16.mxu1 %v2211_v45  ;;  %v2269_v45 = vld [vmem:[#allocation5 + $0xd0] ss:$20 sps:$4 sm:$0xff]  }
  0x83   :  { %1061 = vmatpush1.bf16.msra.mxu0 %v2233_v27  ;;  %v2268_v27 = vld [vmem:[#allocation5 + $0xcc] ss:$20 sps:$4 sm:$0xff]  }
  0x84   :  { %1062 = vmatprep.subr.bf16.mxu0 %v2238_v28  ;;  %v2266_v28 = vld [vmem:[#allocation5 + $0xc8] ss:$20 sps:$4 sm:$0xff]  }
  0x85   :  { %919 = vmatpush2.bf16.msra.mxu1 %v2209_v46  ;;  %v2271_v46 = vld [vmem:[#allocation5 + $0xd4] ss:$20 sps:$4 sm:$0xff]  }
  0x86   :  { %920 = vmatprep.subr.bf16.mxu1 %v2214_v47  ;;  %v2275_v47 = vld [vmem:[#allocation5 + $0xa8] ss:$20 sps:$4 sm:$0xff]  }
  0x87   :  { %1063 = vmatpush1.bf16.msra.mxu0 %v2236_v29  ;;  %v2274_v29 = vld [vmem:[#allocation5 + $0xa4] ss:$20 sps:$4 sm:$0xff]  }
  0x88   :  { %1064 = vmatprep.subr.bf16.mxu0 %v2241_v30  ;;  %v2272_v30 = vld [vmem:[#allocation5 + $0xa0] ss:$20 sps:$4 sm:$0xff]  }
  0x89   :  { %921 = vmatpush2.bf16.msra.mxu1 %v2212_v48  ;;  %v2277_v48 = vld [vmem:[#allocation5 + $0xac] ss:$20 sps:$4 sm:$0xff]  }
  0x8a   :  { %922 = vmatprep.subr.bf16.mxu1 %v2217_v49  ;;  %v2281_v49 = vld [vmem:[#allocation5 + $0x80] ss:$20 sps:$4 sm:$0xff]  }
  0x8b   :  { %1065 = vmatpush1.bf16.msra.mxu0 %v2239_v31  ;;  %v2280_v31 = vld [vmem:[#allocation5 + $0x7c] ss:$20 sps:$4 sm:$0xff]  }
  0x8c   :  { %1066 = vmatprep.subr.bf16.mxu0 %v2244_v32  ;;  %v2278_v32 = vld [vmem:[#allocation5 + $0x78] ss:$20 sps:$4 sm:$0xff]  }
  0x8d   :  { %923 = vmatpush2.bf16.msra.mxu1 %v2215_v50  ;;  %v2283_v50 = vld [vmem:[#allocation5 + $0x84] ss:$20 sps:$4 sm:$0xff]  }
  0x8e   :  { %924 = vmatprep.subr.bf16.mxu1 %v2220_v51  ;;  %v2287_v51 = vld [vmem:[#allocation5 + $0x58] ss:$20 sps:$4 sm:$0xff]  }
  0x8f   :  { %1067 = vmatpush1.bf16.msra.mxu0 %v2242_v33  ;;  %v2286_v33 = vld [vmem:[#allocation5 + $0x54] ss:$20 sps:$4 sm:$0xff]  }
  0x90   :  { %1068 = vmatprep.subr.bf16.mxu0 %v2247_v34  ;;  %v2284_v34 = vld [vmem:[#allocation5 + $0x50] ss:$20 sps:$4 sm:$0xff]  }
  0x91   :  { %925 = vmatpush2.bf16.msra.mxu1 %v2218_v52  ;;  %v2289_v52 = vld [vmem:[#allocation5 + $0x5c] ss:$20 sps:$4 sm:$0xff]  }
  0x92   :  { %926 = vmatprep.subr.bf16.mxu1 %v2223_v53  ;;  %v2293_v53 = vld [vmem:[#allocation5 + $0x30] ss:$20 sps:$4 sm:$0xff]  }
  0x93   :  { %1069 = vmatpush1.bf16.msra.mxu0 %v2245_v35  ;;  %v2292_v35 = vld [vmem:[#allocation5 + $0x2c] ss:$20 sps:$4 sm:$0xff]  }
  0x94   :  { %1070 = vmatprep.subr.bf16.mxu0 %v2250_v36  ;;  %v2290_v36 = vld [vmem:[#allocation5 + $0x28] ss:$20 sps:$4 sm:$0xff]  }
  0x95   :  { %927 = vmatpush2.bf16.msra.mxu1 %v2221_v54  ;;  %v2295_v54 = vld [vmem:[#allocation5 + $0x34] ss:$20 sps:$4 sm:$0xff]  }
  0x96   :  { %928 = vmatprep.subr.bf16.mxu1 %v2226_v55  ;;  %v2299_v55 = vld [vmem:[#allocation5 + $0x8] ss:$20 sps:$4 sm:$0xff]  }
  0x97   :  { %1071 = vmatpush1.bf16.msra.mxu0 %v2248_v37  ;;  %v2298_v37 = vld [vmem:[#allocation5 + $0x4] ss:$20 sps:$4 sm:$0xff]  }
  0x98   :  { %1072 = vmatprep.subr.bf16.mxu0 %v2253_v38  ;;  %v2296_v38 = vld [vmem:[#allocation5] ss:$20 sps:$4 sm:$0xff]  }
  0x99   :  { %929 = vmatpush2.bf16.msra.mxu1 %v2224_v56  ;;  %v2301_v56 = vld [vmem:[#allocation5 + $0xc] ss:$20 sps:$4 sm:$0xff]  }
  0x9a   :  { %930 = vmatprep.subr.bf16.mxu1 %v2229_v57  ;;  %v2305_v57 = vld [vmem:[#allocation5 + $0x260] ss:$20 sps:$4 sm:$0xff]  }
  0x9b   :  { %1073 = vmatpush1.bf16.msra.mxu0 %v2251_v39  ;;  %v2304_v39 = vld [vmem:[#allocation5 + $0x25c] ss:$20 sps:$4 sm:$0xff]  }
  0x9c   :  { %1642 = vmatprep.subr.bf16.mxu0 %v2256_v40  ;;  %v2302_v40 = vld [vmem:[#allocation5 + $0x258] ss:$20 sps:$4 sm:$0xff]  }
  0x9d   :  { %931 = vmatpush2.bf16.msra.mxu1 %v2227_v58  ;;  %v2307_v58 = vld [vmem:[#allocation5 + $0x264] ss:$20 sps:$4 sm:$0xff]  }
  0x9e   :  { %1683 = vmatprep.subr.bf16.mxu1 %v2259_v42  ;;  %v2308_v42 = vld [vmem:[#allocation5 + $0x230] ss:$20 sps:$4 sm:$0xff]  }
 0x11e   :  { %v603_v61 = vpop.f32.mrf.mxu0 }
 0x11f   :  { %v604_v12 = vadd.f32 %v603_v61, %v162_v10  ;;  %v2317_v61 = vld [vmem:[#allocation5 + $0x210] ss:$20 sps:$4 sm:$0xff]   ;;  %v737_v10 = vrot.slane %v728_v5, %v2798_v9 }
 0x120   :  { %v605_v62 = vpop.f32.mrf.mxu0  ;;  %v644_v63 = vpop.f32.mrf.mxu1 }
 0x121   :  { %v606_v13 = vadd.f32 %v605_v62, %v166_v11  ;;  %v645_v14 = vadd.f32 %v644_v63, %v604_v12  ;;  %v2319_v62 = vld [vmem:[#allocation5 + $0x214] ss:$20 sps:$4 sm:$0xff]  }
 0x122   :  { %v607_v0 = vpop.f32.mrf.mxu0  ;;  %v646_v1 = vpop.f32.mrf.mxu1  ;;  %v2323_v63 = vld [vmem:[#allocation5 + $0x1e8] ss:$20 sps:$4 sm:$0xff]  }
 0x123   :  { %v647_v16 = vadd.f32 %v646_v1, %v606_v13  ;;  %v2325_v0 = vld [vmem:[#allocation5 + $0x1ec] ss:$20 sps:$4 sm:$0xff]  }
 0x124   :  { %v608_v2 = vpop.f32.mrf.mxu0  ;;  %v648_v3 = vpop.f32.mrf.mxu1  ;;  %v2329_v1 = vld [vmem:[#allocation5 + $0x1c0] ss:$20 sps:$4 sm:$0xff]  }
 0x125   :  { %v2331_v2 = vld [vmem:[#allocation5 + $0x1c4] ss:$20 sps:$4 sm:$0xff]  }
 0x126   :  { %v649_v4 = vpop.f32.mrf.mxu1  ;;  %v2335_v3 = vld [vmem:[#allocation5 + $0x198] ss:$20 sps:$4 sm:$0xff]  }
 0x127   :  { %v2337_v4 = vld [vmem:[#allocation5 + $0x19c] ss:$20 sps:$4 sm:$0xff]  }
 0x13e   :  { %v685_v15 = vpop.f32.mrf.mxu0 }
 0x13f   :  { %v686_v17 = vadd.f32 %v685_v15, %v645_v14 }
 0x140   :  { %v687_v18 = vpop.f32.mrf.mxu0 }
 0x141   :  { %v688_v19 = vadd.f32 %v687_v18, %v647_v16  ;;  %v692_v20 = vmax.f32 %v686_v17, 0.0 }
 0x142   :  { %v689_v21 = vpop.f32.mrf.mxu0 }
 0x143   :  { %v693_v22 = vmax.f32 %v688_v19, 0.0  ;;  %v694_v25 = vpack.c.bf16 %v692_v20, %v692_v20  ;;  %v946_v19 = vld [vmem:[%s2883_s9] sm:$0xff] }
 0x144   :  { %v690_v23 = vpop.f32.mrf.mxu0 }
 0x145   :  { %v695_v24 = vpack.c.bf16 %v693_v22, %v693_v22  ;;  %v2254_v23 = vld [vmem:[#allocation5 + $0x118] ss:$20 sps:$4 sm:$0xff]  }
 0x147   :  { %932 = vmatprep.mubr.bf16.mxu1 %v695_v24 }
 0x148   :  { %933 = vmatmul.mubr.bf16.vlgmr.msra.gmra.mxu1 %v694_v25  ;;  %v2262_v25 = vld [vmem:[#allocation5 + $0xf4] ss:$20 sps:$4 sm:$0xff]  }
 0x149   :  { %1684 = vmatpush1.bf16.msra.mxu1 %v2257_v41  ;;  %v2310_v41 = vld [vmem:[#allocation5 + $0x234] ss:$20 sps:$4 sm:$0xff]  }
 0x14a   :  { %1685 = vmatprep.subr.bf16.mxu1 %v2265_v44  ;;  %v2314_v44 = vld [vmem:[#allocation5 + $0x208] ss:$20 sps:$4 sm:$0xff]  }
 0x14d   :  { %1686 = vmatpush1.bf16.msra.mxu1 %v2263_v43  ;;  %v2316_v43 = vld [vmem:[#allocation5 + $0x20c] ss:$20 sps:$4 sm:$0xff]  }
 0x14e   :  { %1687 = vmatprep.subr.bf16.mxu1 %v2271_v46  ;;  %v2320_v46 = vld [vmem:[#allocation5 + $0x1e0] ss:$20 sps:$4 sm:$0xff]  }
 0x151   :  { %1688 = vmatpush1.bf16.msra.mxu1 %v2269_v45  ;;  %v2322_v45 = vld [vmem:[#allocation5 + $0x1e4] ss:$20 sps:$4 sm:$0xff]  }
 0x152   :  { %1689 = vmatprep.subr.bf16.mxu1 %v2277_v48  ;;  %v2326_v48 = vld [vmem:[#allocation5 + $0x1b8] ss:$20 sps:$4 sm:$0xff]  }
 0x155   :  { %1690 = vmatpush1.bf16.msra.mxu1 %v2275_v47  ;;  %v2328_v47 = vld [vmem:[#allocation5 + $0x1bc] ss:$20 sps:$4 sm:$0xff]  }
 0x156   :  { %1691 = vmatprep.subr.bf16.mxu1 %v2283_v50  ;;  %v2332_v50 = vld [vmem:[#allocation5 + $0x190] ss:$20 sps:$4 sm:$0xff]  }
 0x159   :  { %1692 = vmatpush1.bf16.msra.mxu1 %v2281_v49  ;;  %v2334_v49 = vld [vmem:[#allocation5 + $0x194] ss:$20 sps:$4 sm:$0xff]  }
 0x15a   :  { %1693 = vmatprep.subr.bf16.mxu1 %v2289_v52  ;;  %v2338_v52 = vld [vmem:[#allocation5 + $0x168] ss:$20 sps:$4 sm:$0xff]  }
 0x15d   :  { %1694 = vmatpush1.bf16.msra.mxu1 %v2287_v51  ;;  %v2340_v51 = vld [vmem:[#allocation5 + $0x16c] ss:$20 sps:$4 sm:$0xff]  }
 0x15e   :  { %1695 = vmatprep.subr.bf16.mxu1 %v2295_v54  ;;  %v2341_v54 = vld [vmem:[#allocation5 + $0x170] ss:$20 sps:$4 sm:$0xff]  }
 0x161   :  { %1696 = vmatpush1.bf16.msra.mxu1 %v2293_v53  ;;  %v2343_v53 = vld [vmem:[#allocation5 + $0x174] ss:$20 sps:$4 sm:$0xff]  }
 0x162   :  { %1697 = vmatprep.subr.bf16.mxu1 %v2301_v56  ;;  %v2344_v56 = vld [vmem:[#allocation5 + $0x140] ss:$20 sps:$4 sm:$0xff]  }
 0x165   :  { %1698 = vmatpush1.bf16.msra.mxu1 %v2299_v55  ;;  %v2346_v55 = vld [vmem:[#allocation5 + $0x144] ss:$20 sps:$4 sm:$0xff]  }
 0x166   :  { %1699 = vmatprep.subr.bf16.mxu1 %v2307_v58  ;;  %v2347_v58 = vld [vmem:[#allocation5 + $0x148] ss:$20 sps:$4 sm:$0xff]  }
 0x169   :  { %1700 = vmatpush2.bf16.msra.mxu1 %v2305_v57  ;;  %v2349_v57 = vld [vmem:[#allocation5 + $0x14c] ss:$20 sps:$4 sm:$0xff]  }
 0x16a   :  { %1701 = vmatprep.subr.bf16.mxu1 %v2313_v60  ;;  %v966_v60 = vld [vmem:[%s2880_s6] sm:$0x3] }
 0x16d   :  { %1702 = vmatpush2.bf16.msra.mxu1 %v2311_v59  ;;  %v2350_v59 = vld [vmem:[#allocation5 + $0x268] ss:$20 sps:$4 sm:$0xff]  }
 0x16e   :  { %1703 = vmatprep.subr.bf16.mxu1 %v2319_v62  ;;  %v975_v62 = vrot.slane %v966_v60, %v2798_v9 }
 0x171   :  { %1704 = vmatpush2.bf16.msra.mxu1 %v2317_v61  ;;  %v971_v61 = vrot.slane %v966_v60, %v2792_v7  ;;  %v1219_v60 = vsub.s32 4, %v2789_v6 }
 0x172   :  { %1705 = vmatprep.subr.bf16.mxu1 %v2325_v0 }
 0x175   :  { %1706 = vmatpush2.bf16.msra.mxu1 %v2323_v63 }
 0x176   :  { %1707 = vmatprep.subr.bf16.mxu1 %v2331_v2 }
 0x179   :  { %1708 = vmatpush2.bf16.msra.mxu1 %v2329_v1 }
 0x17a   :  { %1709 = vmatprep.subr.bf16.mxu1 %v2337_v4 }
 0x17d   :  { %1710 = vmatpush2.bf16.msra.mxu1 %v2335_v3 }
 0x17e   :  { %1711 = vmatprep.subr.bf16.mxu1 %v2343_v53 }
 0x181   :  { %1712 = vmatpush2.bf16.msra.mxu1 %v2341_v54 }
 0x182   :  { %1713 = vmatprep.subr.bf16.mxu1 %v2349_v57 }
 0x185   :  { %1714 = vmatpush2.bf16.msra.mxu1 %v2347_v58 }
 0x208   :  { %v934_v11 = vpop.f32.mrf.mxu1 }
 0x209   :  { %v935_v12 = vadd.f32 %v934_v11, %v733_v8  ;;  %v2351_v11 = vld [vmem:[#allocation5 + $0x128] ss:$20 sps:$4 sm:$0xff]  }
 0x20a   :  { %v936_v13 = vpop.f32.mrf.mxu1 }
 0x20b   :  { %941 = vst [vmem:[%s2885_s11] sm:$0xff] %v935_v12  ;;  %v937_v14 = vadd.f32 %v936_v13, %v737_v10  ;;  %v2352_v13 = vld [vmem:[#allocation5 + $0x240] ss:$20 sps:$4 sm:$0xff]  }
 0x20c   :  { %v938_v15 = vpop.f32.mrf.mxu1 }
 0x20d   :  { %942 = vst [vmem:[%s2885_s11 + $0x8] sm:$0xff] %v937_v14  ;;  %v943_v16 = vmul.f32 0.5, %v937_v14  ;;  %v2353_v14 = vld [vmem:[#allocation5 + $0x100] ss:$20 sps:$4 sm:$0xff]   ;;  %v2354_v15 = vld [vmem:[#allocation5 + $0x218] ss:$20 sps:$4 sm:$0xff]  }
 0x20e   :  { %v939_v17 = vpop.f32.mrf.mxu1 }
 0x20f   :  { %v944_v18 = vmul.f32 1.442695, %v943_v16  ;;  %v2355_v16 = vld [vmem:[#allocation5 + $0xd8] ss:$20 sps:$4 sm:$0xff]   ;;  %v2356_v17 = vld [vmem:[#allocation5 + $0x1f0] ss:$20 sps:$4 sm:$0xff]  }
 0x211   :  { %2366 = vpow2.f32 %v944_v18  ;;  %v2357_v18 = vld [vmem:[#allocation5 + $0xb0] ss:$20 sps:$4 sm:$0xff]  }
 0x21e   :  { %v2367_v20 = vpop.eup %2366 }
 0x21f   :  { %v947_v21 = vmul.f32 %v2367_v20, %v946_v19  ;;  %v2358_v19 = vld [vmem:[#allocation5 + $0x1c8] ss:$20 sps:$4 sm:$0xff]  }
 0x220   :  { %v2359_v20 = vld [vmem:[#allocation5 + $0x88] ss:$20 sps:$4 sm:$0xff]  }
 0x221   :  { %v948_v22 = vadd.f32 %v947_v21, %v935_v12  ;;  %v2360_v21 = vld [vmem:[#allocation5 + $0x1a0] ss:$20 sps:$4 sm:$0xff]  }
 0x223   :  { %v949_v24 = vpack.c.bf16 %v948_v22, %v948_v22  ;;  %v2361_v22 = vld [vmem:[#allocation5 + $0x60] ss:$20 sps:$4 sm:$0xff]  }
 0x225   :  { %1091 = vmatmul.mubr.bf16.vlgmr.msra.gmra.mxu0 %v949_v24  ;;  %v2363_v24 = vld [vmem:[#allocation5 + $0x38] ss:$20 sps:$4 sm:$0xff]  }
 0x226   :  { %1643 = vmatpush1.bf16.msra.mxu0 %v2254_v23  ;;  %v2362_v23 = vld [vmem:[#allocation5 + $0x178] ss:$20 sps:$4 sm:$0xff]  }
 0x227   :  { %1644 = vmatprep.subr.bf16.mxu0 %v2262_v25  ;;  %v2364_v25 = vld [vmem:[#allocation5 + $0x150] ss:$20 sps:$4 sm:$0xff]  }
 0x22a   :  { %1645 = vmatpush1.bf16.msra.mxu0 %v2260_v26  ;;  %v2365_v26 = vld [vmem:[#allocation5 + $0x10] ss:$20 sps:$4 sm:$0xff]  }
 0x22b   :  { %1646 = vmatprep.subr.bf16.mxu0 %v2268_v27  ;;  %v1211_v27 = vsub.s32 2, %v2789_v6 }
 0x22e   :  { %1647 = vmatpush1.bf16.msra.mxu0 %v2266_v28  ;;  %v1199_v28 = vld [vmem:[%s2882_s8] sm:$0x1f]  ;;  %s2461_s8 = smov [#allocation7]  }
 0x22f   :  { %1648 = vmatprep.subr.bf16.mxu0 %v2274_v29  ;;  %v1215_v29 = vsub.s32 3, %v2789_v6  ;;  %s1810_s26 = sshll.u32 %s2461_s8, 4  ;;  %s1811_s26 = int_to_ptr.vmem [resolvable:$true] %s1810_s26 }
 0x230   :  { %s2428_s27 = scalar_lea.vmem %s1811_s26, 640  ;;  %p2433_p11 = scmp.lt.s32.totalorder %s1811_s26, %s1811_s26 }
 0x231   :  { %p2429_p10 = scmp.ne.s32.totalorder %s1811_s26, %s2428_s27  ;;  %p2434_p12 = scmp.lt.s32.totalorder %s2428_s27, %s2428_s27 }
 0x232   :  { %1649 = vmatpush1.bf16.msra.mxu0 %v2272_v30  ;;  %v1204_v30 = vrot.slane %v1199_v28, %v2792_v7 }
 0x233   :  { %1650 = vmatprep.subr.bf16.mxu0 %v2280_v31  ;;  %v1212_v31 = vrot.slane %v1199_v28, %v1211_v27  ;;  %p2435_p13 = por %p2434_p12, %p2433_p11 }
 0x235   :  { %p2436_p0 = pnand %p2435_p13, %p2429_p10 }
 0x236   :  { %1651 = vmatpush1.bf16.msra.mxu0 %v2278_v32  ;;  %v1208_v32 = vrot.slane %v1199_v28, %v2798_v9 }
 0x237   :  { %1652 = vmatprep.subr.bf16.mxu0 %v2286_v33  ;;  %v1216_v33 = vrot.slane %v1199_v28, %v1215_v29 }
 0x23a   :  { %1653 = vmatpush1.bf16.msra.mxu0 %v2284_v34 }
 0x23b   :  { %1654 = vmatprep.subr.bf16.mxu0 %v2292_v35 }
 0x23e   :  { %1655 = vmatpush1.bf16.msra.mxu0 %v2290_v36 }
 0x23f   :  { %1656 = vmatprep.subr.bf16.mxu0 %v2298_v37 }
 0x242   :  { %1657 = vmatpush1.bf16.msra.mxu0 %v2296_v38 }
 0x243   :  { %1658 = vmatprep.subr.bf16.mxu0 %v2304_v39 }
 0x246   :  { %1659 = vmatpush2.bf16.msra.mxu0 %v2302_v40 }
 0x247   :  { %1660 = vmatprep.subr.bf16.mxu0 %v2310_v41 }
 0x24a   :  { %1661 = vmatpush2.bf16.msra.mxu0 %v2308_v42 }
 0x24b   :  { %1662 = vmatprep.subr.bf16.mxu0 %v2316_v43 }
 0x24e   :  { %1663 = vmatpush2.bf16.msra.mxu0 %v2314_v44 }
 0x24f   :  { %1664 = vmatprep.subr.bf16.mxu0 %v2322_v45 }
 0x252   :  { %1665 = vmatpush2.bf16.msra.mxu0 %v2320_v46 }
 0x253   :  { %1666 = vmatprep.subr.bf16.mxu0 %v2328_v47 }
 0x256   :  { %1667 = vmatpush2.bf16.msra.mxu0 %v2326_v48 }
 0x257   :  { %1668 = vmatprep.subr.bf16.mxu0 %v2334_v49 }
 0x25a   :  { %1669 = vmatpush2.bf16.msra.mxu0 %v2332_v50 }
 0x25b   :  { %1670 = vmatprep.subr.bf16.mxu0 %v2340_v51 }
 0x25e   :  { %1671 = vmatpush2.bf16.msra.mxu0 %v2338_v52 }
 0x25f   :  { %1672 = vmatprep.subr.bf16.mxu0 %v2346_v55 }
 0x262   :  { %1673 = vmatpush2.bf16.msra.mxu0 %v2344_v56 }
 0x263   :  { %2032 = vmatprep.subr.bf16.mxu0 %v2350_v59 }
 0x2e5   :  { %v1092_v63 = vpop.f32.mrf.mxu0 }
 0x2e6   :  { %v1093_v0 = vadd.f32 %v1092_v63, %v971_v61 }
 0x2e7   :  { %v1094_v1 = vpop.f32.mrf.mxu0 }
 0x2e8   :  { %v1095_v2 = vadd.f32 %v1094_v1, %v975_v62  ;;  %v1099_v3 = vmax.f32 %v1093_v0, 0.0  ;;  %v1220_v62 = vrot.slane %v1199_v28, %v1219_v60 }
 0x2e9   :  { %v1096_v4 = vpop.f32.mrf.mxu0 }
 0x2ea   :  { %v1100_v5 = vmax.f32 %v1095_v2, 0.0  ;;  %v1101_v12 = vpack.c.bf16 %v1099_v3, %v1099_v3 }
 0x2eb   :  { %v1097_v8 = vpop.f32.mrf.mxu0 }
 0x2ec   :  { %v1102_v10 = vpack.c.bf16 %v1100_v5, %v1100_v5 }
 0x2ee   :  { %1674 = vmatprep.mubr.bf16.mxu0 %v1102_v10  ;;  %1715 = vmatprep.mubr.bf16.mxu1 %v1102_v10 }
 0x2ef   :  { %1675 = vmatmul.mubr.bf16.vlgmr.msra.gmra.mxu0 %v1101_v12  ;;  %1716 = vmatmul.mubr.bf16.vlgmr.msra.gmra.mxu1 %v1101_v12 }
 0x2f0   :  { %2033 = vmatpush3.bf16.msra.mxu0 %v2351_v11  ;;  %1756 = vmatprep.mubr.bf16.mxu0 %v1102_v10 }
 0x2f1   :  { %2034 = vmatprep.subr.bf16.mxu0 %v2352_v13 }
 0x2f4   :  { %2035 = vmatpush3.bf16.msra.mxu0 %v2353_v14 }
 0x2f5   :  { %2036 = vmatprep.subr.bf16.mxu0 %v2354_v15 }
 0x2f8   :  { %2037 = vmatpush3.bf16.msra.mxu0 %v2355_v16 }
 0x2f9   :  { %2038 = vmatprep.subr.bf16.mxu0 %v2356_v17 }
 0x2fc   :  { %2039 = vmatpush3.bf16.msra.mxu0 %v2357_v18 }
 0x2fd   :  { %2040 = vmatprep.subr.bf16.mxu0 %v2358_v19 }
 0x300   :  { %2041 = vmatpush3.bf16.msra.mxu0 %v2359_v20 }
 0x301   :  { %2042 = vmatprep.subr.bf16.mxu0 %v2360_v21 }
 0x304   :  { %2043 = vmatpush3.bf16.msra.mxu0 %v2361_v22 }
 0x305   :  { %2044 = vmatprep.subr.bf16.mxu0 %v2362_v23 }
 0x308   :  { %2045 = vmatpush3.bf16.msra.mxu0 %v2363_v24 }
 0x309   :  { %2046 = vmatprep.subr.bf16.mxu0 %v2364_v25 }
 0x30c   :  { %2047 = vmatpush3.bf16.msra.mxu0 %v2365_v26 }
 0x30f   :  { %1757 = vmatmul.mubr.bf16.vlgmr.msra.gmra.mxu0 %v1101_v12 }
 0x3af   :  { %v1676_v34 = vpop.f32.mrf.mxu0  ;;  %v1717_v35 = vpop.f32.mrf.mxu1 }
 0x3b0   :  { %v1677_v36 = vadd.f32 %v1676_v34, %v1204_v30  ;;  %v1718_v37 = vadd.f32 %v1717_v35, %v1212_v31 }
 0x3b1   :  { %v1678_v38 = vpop.f32.mrf.mxu0  ;;  %v1719_v39 = vpop.f32.mrf.mxu1 }
 0x3b2   :  { %v1764_v40 = vsub.f32 0.0, %v1677_v36  ;;  %v1766_v41 = vsub.f32 0.0, %v1718_v37  ;;  %v1679_v42 = vadd.f32 %v1678_v38, %v1208_v32  ;;  %v1720_v43 = vadd.f32 %v1719_v39, %v1216_v33 }
 0x3b3   :  { %v1680_v44 = vpop.f32.mrf.mxu0  ;;  %v1721_v45 = vpop.f32.mrf.mxu1 }
 0x3b4   :  { %v1769_v46 = vmul.f32 1.442695, %v1764_v40  ;;  %v1773_v47 = vmul.f32 1.442695, %v1766_v41  ;;  %v1765_v48 = vsub.f32 0.0, %v1679_v42  ;;  %v1767_v7 = vsub.f32 0.0, %v1720_v43 }
 0x3b5   :  { %v1681_v49 = vpop.f32.mrf.mxu0  ;;  %v1722_v50 = vpop.f32.mrf.mxu1 }
 0x3b6   :  { %2368 = vpow2.f32 %v1769_v46  ;;  %v1771_v9 = vmul.f32 1.442695, %v1765_v48  ;;  %v1775_v51 = vmul.f32 1.442695, %v1767_v7 }
 0x3b7   :  { %2370 = vpow2.f32 %v1773_v47 }
 0x3b8   :  { %2372 = vpow2.f32 %v1771_v9 }
 0x3b9   :  { %2374 = vpow2.f32 %v1775_v51 }
 0x3c3   :  { %v2369_v52 = vpop.eup %2368 }
 0x3c4   :  { %v2371_v53 = vpop.eup %2370  ;;  %v1779_v54 = vadd.f32 1.0, %v2369_v52 }
 0x3c5   :  { %v2373_v55 = vpop.eup %2372  ;;  %v1781_v56 = vadd.f32 1.0, %v2371_v53 }
 0x3c6   :  { %v2375_v57 = vpop.eup %2374  ;;  %2376 = vrcp.f32 %v1779_v54  ;;  %v1780_v58 = vadd.f32 1.0, %v2373_v55 }
 0x3c7   :  { %2378 = vrcp.f32 %v1781_v56  ;;  %v1782_v59 = vadd.f32 1.0, %v2375_v57 }
 0x3c8   :  { %2380 = vrcp.f32 %v1780_v58 }
 0x3c9   :  { %2382 = vrcp.f32 %v1782_v59 }
 0x3cf   :  { %v2048_v61 = vpop.f32.mrf.mxu0 }
 0x3d1   :  { %v2049_v63 = vpop.f32.mrf.mxu0 }
 0x3d2   :  { %v2050_v0 = vadd.f32 %v2049_v63, %v2048_v61 }
 0x3d3   :  { %v2377_v1 = vpop.eup %2376  ;;  %v2051_v2 = vpop.f32.mrf.mxu0 }
 0x3d4   :  { %v2379_v3 = vpop.eup %2378  ;;  %v1789_v4 = vmax.f32 %v2377_v1, 0.0  ;;  %v1759_v5 = vadd.f32 %v2050_v0, %v1220_v62 }
 0x3d5   :  { %v2381_v8 = vpop.eup %2380  ;;  %v1791_v10 = vmax.f32 %v2379_v3, 0.0  ;;  %v2052_v11 = vpop.f32.mrf.mxu0 }
 0x3d6   :  { %v2383_v12 = vpop.eup %2382  ;;  %v1794_v13 = vmin.f32 %v1789_v4, 1.0  ;;  %v1790_v14 = vmax.f32 %v2381_v8, 0.0  ;;  %v1768_v15 = vsub.f32 0.0, %v1759_v5 }
 0x3d7   :  { %v1796_v16 = vmin.f32 %v1791_v10, 1.0  ;;  %v1792_v17 = vmax.f32 %v2383_v12, 0.0 }
 0x3d8   :  { %1799 = vst [vmem:[#allocation7] sm:$0xff] %v1794_v13  ;;  %v1795_v6 = vmin.f32 %v1790_v14, 1.0  ;;  %v1777_v18 = vmul.f32 1.442695, %v1768_v15 }
 0x3d9   :  { %1801 = vst [vmem:[#allocation7 + $0x10] sm:$0xff] %v1796_v16  ;;  %v1797_v19 = vmin.f32 %v1792_v17, 1.0 }
 0x3da   :  { %1800 = vst [vmem:[#allocation7 + $0x8] sm:$0xff] %v1795_v6  ;;  %2384 = vpow2.f32 %v1777_v18 }
 0x3db   :  { %1802 = vst [vmem:[#allocation7 + $0x18] sm:$0xff] %v1797_v19 }
 0x3e7   :  { %v2385_v20 = vpop.eup %2384 }
 0x3e8   :  { %v1783_v21 = vadd.f32 1.0, %v2385_v20 }
 0x3ea   :  { %2386 = vrcp.f32 %v1783_v21 }
 0x3f7   :  { %v2387_v22 = vpop.eup %2386 }
 0x3f8   :  { %v1793_v23 = vmax.f32 %v2387_v22, 0.0 }
 0x3fa   :  { %v1798_v24 = vmin.f32 %v1793_v23, 1.0 }
 0x3fc   :  { %1803 = vst [vmem:[#allocation7 + $0x20] sm:$0xff] %v1798_v24 }
 0x3fd   :  { %2439 = shalt.err (!%p2436_p0)
}
 0x3fe   :  { %1813 = dma.vmem_to_hbm [thread:$0]  %s1811_s26, 640, %s2884_s10, [#allocation4]  }
 0x3ff   :  { %2452 = dma.done.wait [#allocation4], 640  }
 0x400   :  { %2453 = vsyncadd [#allocation4], 4294966656 }
 0x401   :  { %1821 = vsyncpa [#allocation3], 1 }
 0x402   :  { %1822 = vsyncpa [#allocation6], 1 }
 0x403   :  { %1823 = vsyncpa [#allocation4], 1 }

</bundles_post_ra>
